<compile_context>
chip_gen: v6e
topology: v6e:2x2x1
jax: 0.10.0
libtpu: 0.0.40
codegen_flags: <defaults>
</compile_context>

<pallas_src>
import functools

import jax
import jax.numpy as jnp
from jax import lax
from jax.experimental import pallas as pl
from jax.experimental.pallas import tpu as pltpu


# ----------------------------------------------------------------------------
# Kernel 1: Conv1d + GroupNorm(1, C_out) + CELU (+ residual).  One sample per
# grid step; channels on lanes; K conv taps = K accumulated MXU matmuls.
# ----------------------------------------------------------------------------
def _conv_gn_celu_kernel(xp_ref, w_ref, b_ref, g_ref, beta_ref, o_ref, *,
                         ksize, dil, length, residual):
    xp = xp_ref[0]                                     # (Lp, Cin) f32
    cout = o_ref.shape[-1]
    acc = jnp.zeros((length, cout), jnp.float32)
    for k in range(ksize):                             # static unroll
        seg = xp[k * dil:k * dil + length, :]
        acc = acc + jnp.dot(seg.astype(jnp.bfloat16), w_ref[k],
                            preferred_element_type=jnp.float32)
    acc = acc + b_ref[...]

    # GroupNorm(num_groups=1): normalize over the whole (L, C_out) map/sample.
    mu = jnp.mean(acc)
    var = jnp.mean((acc - mu) ** 2)
    h = (acc - mu) * lax.rsqrt(var + 1e-5) * g_ref[...] + beta_ref[...]

    # CELU(alpha=1)
    h = jnp.where(h > 0, h, jnp.exp(h) - 1.0)

    if residual:                                       # static Python bool
        pad = dil * (ksize // 2)
        h = h + xp[pad:pad + length, :]
    o_ref[0] = h.astype(o_ref.dtype)


def conv_gn_celu(x, lp, *, resnet):
    """x: (B, L, Cin) f32  ->  (B, L, Cout) f32."""
    B, L, Cin = x.shape
    K, dil = lp["ksize"], lp["dil"]
    Cout = lp["w"].shape[-1]
    pad = dil * (K // 2)
    xp = jnp.pad(x, ((0, 0), (pad, pad), (0, 0)))      # glue: zero-pad length
    Lp = L + 2 * pad
    residual = bool(resnet and Cin == Cout)

    kernel = functools.partial(_conv_gn_celu_kernel, ksize=K, dil=dil,
                               length=L, residual=residual)
    full = lambda a: pl.BlockSpec(a.shape, lambda i, _n=a.ndim: (0,) * _n)
    return pl.pallas_call(
        kernel,
        grid=(B,),
        in_specs=[pl.BlockSpec((1, Lp, Cin), lambda i: (i, 0, 0)),
                  full(lp["w"]), full(lp["b"]),
                  full(lp["gamma"]), full(lp["beta"])],
        out_specs=pl.BlockSpec((1, L, Cout), lambda i: (i, 0, 0)),
        out_shape=jax.ShapeDtypeStruct((B, L, Cout), jnp.float32),
        compiler_params=pltpu.CompilerParams(
            dimension_semantics=("parallel",)),
    )(xp, lp["w"], lp["b"], lp["gamma"], lp["beta"])


# ----------------------------------------------------------------------------
# Kernel 2: bidirectional LSTM + LayerNorm + CELU + residual, fully fused.
# Input is (T, N, C); recurrence scans axis 0 (matching nn.LSTM batch_first=
# False being fed a (B, L, C) tensor by the torch module).
# ----------------------------------------------------------------------------
def _bilstm_kernel(x_ref, wih_f, whh_f, b_f, wih_b, whh_b, b_b, ln_g, ln_b,
                   o_ref, xwf_s, xwb_s, hf_s, hb_s, *,
                   T, N, C, H, apply_post, residual):
    x = x_ref[...]                                     # (T, N, C) f32
    x2 = x.reshape(T * N, C).astype(jnp.bfloat16)
    # Input projections for all timesteps in one big matmul per direction.
    xwf_s[...] = (jnp.dot(x2, wih_f[...], preferred_element_type=jnp.float32)
                  + b_f[...]).reshape(T, N, 4 * H)
    xwb_s[...] = (jnp.dot(x2, wih_b[...], preferred_element_type=jnp.float32)
                  + b_b[...]).reshape(T, N, 4 * H)

    whhf = whh_f[...]
    whhb = whh_b[...]
    h0 = jnp.zeros((N, H), jnp.float32)

    def _cell(gates, c):                               # PyTorch gate order i,f,g,o
        i = jax.nn.sigmoid(gates[:, 0 * H:1 * H])
        f = jax.nn.sigmoid(gates[:, 1 * H:2 * H])
        g = jnp.tanh(gates[:, 2 * H:3 * H])
        o = jax.nn.sigmoid(gates[:, 3 * H:4 * H])
        c = f * c + i * g
        return o * jnp.tanh(c), c

    def fwd_step(t, carry):
        h, c = carry
        gates = xwf_s[t] + jnp.dot(h, whhf, preferred_element_type=jnp.float32)
        h, c = _cell(gates, c)
        hf_s[t] = h
        return (h, c)

    def bwd_step(s, carry):
        h, c = carry
        t = T - 1 - s
        gates = xwb_s[t] + jnp.dot(h, whhb, preferred_element_type=jnp.float32)
        h, c = _cell(gates, c)
        hb_s[t] = h
        return (h, c)

    lax.fori_loop(0, T, fwd_step, (h0, h0))
    lax.fori_loop(0, T, bwd_step, (h0, h0))

    y = jnp.concatenate([hf_s[...], hb_s[...]], axis=-1).reshape(T * N, 2 * H)
    if apply_post:
        # lstm_ln (LayerNorm over 2H) -> CELU -> (dropout = id) -> residual
        mu = jnp.mean(y, axis=-1, keepdims=True)
        var = jnp.mean((y - mu) ** 2, axis=-1, keepdims=True)
        y = (y - mu) * lax.rsqrt(var + 1e-5) * ln_g[...] + ln_b[...]
        y = jnp.where(y > 0, y, jnp.exp(y) - 1.0)
        if residual:                                   # only when C == 2H
            y = y + x.reshape(T * N, C)
    o_ref[...] = y.reshape(T, N, 2 * H).astype(o_ref.dtype)


def bilstm_post(x, lw, *, apply_post, residual):
    T, N, C = x.shape
    H = lw["whh_f"].shape[0]
    kernel = functools.partial(_bilstm_kernel, T=T, N=N, C=C, H=H,
                               apply_post=apply_post, residual=residual)
    full = lambda a: pl.BlockSpec(a.shape, lambda i, _n=a.ndim: (0,) * _n)
    return pl.pallas_call(
        kernel,
        grid=(1,),
        in_specs=[full(x), full(lw["wih_f"]), full(lw["whh_f"]), full(lw["b_f"]),
                  full(lw["wih_b"]), full(lw["whh_b"]), full(lw["b_b"]),
                  full(lw["ln_g"]), full(lw["ln_b"])],
        out_specs=pl.BlockSpec((T, N, 2 * H), lambda i: (0, 0, 0)),
        out_shape=jax.ShapeDtypeStruct((T, N, 2 * H), jnp.float32),
        scratch_shapes=[pltpu.VMEM((T, N, 4 * H), jnp.float32),
                        pltpu.VMEM((T, N, 4 * H), jnp.float32),
                        pltpu.VMEM((T, N, H), jnp.float32),
                        pltpu.VMEM((T, N, H), jnp.float32)],
        compiler_params=pltpu.CompilerParams(
            dimension_semantics=("arbitrary",)),
    )(x, lw["wih_f"], lw["whh_f"], lw["b_f"],
      lw["wih_b"], lw["whh_b"], lw["b_b"], lw["ln_g"], lw["ln_b"])


# ----------------------------------------------------------------------------
# Kernel 3: nn.MultiheadAttention self-attention + residual.  One batch item
# per grid step; no explicit k.T (dot_general contracts on the feature axis);
# softmax denominator via pl.reciprocal(approx=True).
# ----------------------------------------------------------------------------
def _mha_kernel(x_ref, wq, bq, wk, bk, wv, bv, wo, bo, o_ref, *, nheads):
    x = x_ref[0]                                       # (L, E) f32
    E = x.shape[-1]
    dh = E // nheads
    xb = x.astype(jnp.bfloat16)
    q = jnp.dot(xb, wq[...], preferred_element_type=jnp.float32) + bq[...]
    k = jnp.dot(xb, wk[...], preferred_element_type=jnp.float32) + bk[...]
    v = jnp.dot(xb, wv[...], preferred_element_type=jnp.float32) + bv[...]
    scale = 1.0 / (dh ** 0.5)

    heads = []
    for h in range(nheads):                            # static unroll
        qh = (q[:, h * dh:(h + 1) * dh] * scale).astype(jnp.bfloat16)
        kh = k[:, h * dh:(h + 1) * dh].astype(jnp.bfloat16)
        vh = v[:, h * dh:(h + 1) * dh].astype(jnp.bfloat16)
        s = lax.dot_general(qh, kh, (((1,), (1,)), ((), ())),
                            preferred_element_type=jnp.float32)   # (L, L)
        m = jnp.max(s, axis=-1, keepdims=True)
        p = jnp.exp(s - m)
        denom = jnp.sum(p, axis=-1, keepdims=True)
        p = p * pl.reciprocal(denom, approx=True)
        heads.append(jnp.dot(p.astype(jnp.bfloat16), vh,
                             preferred_element_type=jnp.float32))
    att = jnp.concatenate(heads, axis=-1)              # (L, E)
    out = jnp.dot(att.astype(jnp.bfloat16), wo[...],
                  preferred_element_type=jnp.float32) + bo[...]
    o_ref[0] = (x + out).astype(o_ref.dtype)           # residual x = x + x_a


def mha_self_attention(x, ap, *, nheads):
    B, L, E = x.shape
    kernel = functools.partial(_mha_kernel, nheads=nheads)
    full = lambda a: pl.BlockSpec(a.shape, lambda i, _n=a.ndim: (0,) * _n)
    return pl.pallas_call(
        kernel,
        grid=(B,),
        in_specs=[pl.BlockSpec((1, L, E), lambda i: (i, 0, 0)),
                  full(ap["wq"]), full(ap["bq"]),
                  full(ap["wk"]), full(ap["bk"]),
                  full(ap["wv"]), full(ap["bv"]),
                  full(ap["wo"]), full(ap["bo"])],
        out_specs=pl.BlockSpec((1, L, E), lambda i: (i, 0, 0)),
        out_shape=jax.ShapeDtypeStruct((B, L, E), jnp.float32),
        compiler_params=pltpu.CompilerParams(
            dimension_semantics=("parallel",)),
    )(x, ap["wq"], ap["bq"], ap["wk"], ap["bk"], ap["wv"], ap["bv"],
      ap["wo"], ap["bo"])


# ----------------------------------------------------------------------------
# Parameter construction (deterministic) mirroring the torch constructor.
# ----------------------------------------------------------------------------
def init_params(key, n_in, num_filters=(256,), filter_size=(7,), pool_size=(1,),
                dilation=0, num_lstm_layers=0, num_lstm_units=0, num_att=0,
                resnet=True):
    num_filters = tuple(num_filters)
    filter_size = tuple(filter_size)
    pool_size = tuple(pool_size)
    while len(num_filters) > len(filter_size):
        filter_size = filter_size + (filter_size[-1],)
    while len(num_filters) > len(pool_size):
        pool_size = pool_size + (pool_size[-1],)
    if num_lstm_layers == 0 and num_lstm_units > 0:
        num_lstm_layers = 1

    keys = iter(jax.random.split(key, 32))
    params = {"conv": [], "lstm": None, "att": None}
    cfg = {"resnet": resnet, "num_att": num_att, "lstm_residual": False}

    n_out = n_in
    if len(num_filters) > 0 and num_filters[0] > 0:
        cin = n_in
        for cout, ks, p in zip(num_filters, filter_size, pool_size):
            # TODO(synk): MaxPool1d for pool_size > 1 not implemented
            # (default pool_size=1 is nn.Identity in the torch module).
            assert p == 1, "pool_size > 1 not supported"
            std = (cin * ks) ** -0.5
            params["conv"].append({
                "w": (jax.random.normal(next(keys), (ks, cin, cout),
                                        jnp.float32) * std).astype(jnp.bfloat16),
                "b": jnp.zeros((1, cout), jnp.float32),
                "gamma": jnp.ones((1, cout), jnp.float32),
                "beta": jnp.zeros((1, cout), jnp.float32),
                "ksize": ks, "dil": 2 ** dilation,
            })
            cin = cout
        n_out = num_filters[-1]

    if num_lstm_layers > 0:
        # TODO(synk): only a single (num_lstm_layers == 1) bidirectional layer
        # is implemented; stacked layers would loop this kernel per layer.
        assert num_lstm_layers == 1, "stacked LSTM layers not supported"
        H = num_lstm_units
        C = n_out
        std_i, std_h = C ** -0.5, H ** -0.5
        params["lstm"] = {
            "wih_f": (jax.random.normal(next(keys), (C, 4 * H), jnp.float32)
                      * std_i).astype(jnp.bfloat16),
            "whh_f": jax.random.normal(next(keys), (H, 4 * H), jnp.float32) * std_h,
            "b_f": jnp.zeros((1, 4 * H), jnp.float32),
            "wih_b": (jax.random.normal(next(keys), (C, 4 * H), jnp.float32)
                      * std_i).astype(jnp.bfloat16),
            "whh_b": jax.random.normal(next(keys), (H, 4 * H), jnp.float32) * std_h,
            "b_b": jnp.zeros((1, 4 * H), jnp.float32),
            "ln_g": jnp.ones((1, 2 * H), jnp.float32),
            "ln_b": jnp.zeros((1, 2 * H), jnp.float32),
        }
        cfg["lstm_residual"] = bool(resnet and n_out == 2 * H)
        n_out = 2 * H

    if num_att > 0:
        E = n_out
        std = E ** -0.5

        def proj():
            return (jax.random.normal(next(keys), (E, E), jnp.float32)
                    * std).astype(jnp.bfloat16)

        params["att"] = {
            "wq": proj(), "bq": jnp.zeros((1, E), jnp.float32),
            "wk": proj(), "bk": jnp.zeros((1, E), jnp.float32),
            "wv": proj(), "bv": jnp.zeros((1, E), jnp.float32),
            "wo": proj(), "bo": jnp.zeros((1, E), jnp.float32),
        }

    cfg["n_out"] = n_out
    return params, cfg


# ----------------------------------------------------------------------------
# CNNLSTMEncoder.forward equivalent.  x: (B, n_in, L) -> (B, L, n_out).
# ----------------------------------------------------------------------------
def cnn_lstm_encoder(x, params, cfg):
    h = jnp.transpose(x, (0, 2, 1))                    # (B, L, C): lane-dense C
    for lp in params["conv"]:
        h = conv_gn_celu(h, lp, resnet=cfg["resnet"])
    # torch: x = x.permute(0, 2, 1) -> (B, L, C); `h` already holds that layout.
    if params["lstm"] is not None:
        # nn.LSTM(batch_first=False) fed (B, L, C): recurrence runs over axis 0.
        h = bilstm_post(h, params["lstm"], apply_post=True,
                        residual=cfg["lstm_residual"])
    if params["att"] is not None:
        # torch permutes to (L, B, E) and back around nn.MultiheadAttention;
        # equivalent self-attention over L computed directly on (B, L, E).
        h = mha_self_attention(h, params["att"], nheads=cfg["num_att"])
    # TODO(synk): nn.Dropout is identity here (dropout_rate=0.0 / eval mode).
    return h


if __name__ == "__main__":
    B, N_IN, L = 2, 32, 16
    NUM_FILTERS = (128,)       # lane-dense channel count
    FILTER_SIZE = (7,)
    POOL_SIZE = (1,)
    DILATION = 0
    NUM_LSTM_UNITS = 64        # bidirectional -> 128 == conv channels (residual on)
    NUM_LSTM_LAYERS = 0        # promoted to 1 because num_lstm_units > 0
    NUM_ATT = 4

    key = jax.random.PRNGKey(0)
    pkey, xkey = jax.random.split(key)
    params, cfg = init_params(pkey, N_IN, NUM_FILTERS, FILTER_SIZE, POOL_SIZE,
                              DILATION, NUM_LSTM_LAYERS, NUM_LSTM_UNITS,
                              NUM_ATT, resnet=True)
    x = jax.random.normal(xkey, (B, N_IN, L), jnp.float32)

    out = cnn_lstm_encoder(x, params, cfg)
    out = jax.block_until_ready(out)
    assert out.shape == (B, L, cfg["n_out"]), out.shape
    assert out.dtype == jnp.float32
    assert bool(jnp.all(jnp.isfinite(out)))
    print("KERNEL_OK")
</pallas_src>

<mosaic_0001>
module attributes {stable_mosaic.version = 11 : i64} {
  func.func @_conv_gn_celu_kernel(%arg0: i32, %arg1: memref<1x22x32xf32, #tpu.memory_space<vmem>>, %arg2: memref<7x32x128xbf16, #tpu.memory_space<vmem>>, %arg3: memref<1x128xf32, #tpu.memory_space<vmem>>, %arg4: memref<1x128xf32, #tpu.memory_space<vmem>>, %arg5: memref<1x128xf32, #tpu.memory_space<vmem>>, %arg6: memref<1x16x128xf32, #tpu.memory_space<vmem>>) attributes {dimension_semantics = [#tpu.dimension_semantics<parallel>], iteration_bounds = array<i64: 2>, scalar_prefetch = 0 : i64, scratch_operands = 0 : i64, tpu.core_type = #tpu.core_type<tc>, window_params = [{transform_indices = @transform_0, window_bounds = array<i64: 1, 22, 32>}, {pipeline_mode = #tpu.pipeline_mode<synchronous>, transform_indices = @transform_1, window_bounds = array<i64: 7, 32, 128>}, {pipeline_mode = #tpu.pipeline_mode<synchronous>, transform_indices = @transform_2, window_bounds = array<i64: 1, 128>}, {pipeline_mode = #tpu.pipeline_mode<synchronous>, transform_indices = @transform_3, window_bounds = array<i64: 1, 128>}, {pipeline_mode = #tpu.pipeline_mode<synchronous>, transform_indices = @transform_4, window_bounds = array<i64: 1, 128>}, {transform_indices = @transform_5, window_bounds = array<i64: 1, 16, 128>}]} {
    %c0 = arith.constant 0 : index
    %c0_0 = arith.constant 0 : index
    %c0_1 = arith.constant 0 : index
    %0 = vector.load %arg1[%c0, %c0_0, %c0_1] : memref<1x22x32xf32, #tpu.memory_space<vmem>>, vector<1x22x32xf32>
    %1 = vector.shape_cast %0 : vector<1x22x32xf32> to vector<22x32xf32>
    %cst = arith.constant 0.000000e+00 : f32
    %2 = vector.broadcast %cst : f32 to vector<16x128xf32>
    %3 = vector.extract_strided_slice %1 {offsets = [0, 0], sizes = [16, 32], strides = [1, 1]} : vector<22x32xf32> to vector<16x32xf32>
    %4 = arith.truncf %3 : vector<16x32xf32> to vector<16x32xbf16>
    %c0_2 = arith.constant 0 : index
    %c0_3 = arith.constant 0 : index
    %c0_4 = arith.constant 0 : index
    %5 = vector.load %arg2[%c0_2, %c0_3, %c0_4] : memref<7x32x128xbf16, #tpu.memory_space<vmem>>, vector<1x32x128xbf16>
    %6 = vector.shape_cast %5 : vector<1x32x128xbf16> to vector<32x128xbf16>
    %cst_5 = arith.constant dense<0.000000e+00> : vector<16x128xf32>
    %7 = tpu.matmul %4, %6, %cst_5 {dimension_numbers = #tpu.dot_dimension_numbers<[1], [0], [0], [1], [0, 0, 1, 1], [], []>} : vector<16x32xbf16>, vector<32x128xbf16>, vector<16x128xf32> -> vector<16x128xf32>
    %8 = arith.addf %2, %7 : vector<16x128xf32>
    %9 = vector.extract_strided_slice %1 {offsets = [1, 0], sizes = [16, 32], strides = [1, 1]} : vector<22x32xf32> to vector<16x32xf32>
    %10 = arith.truncf %9 : vector<16x32xf32> to vector<16x32xbf16>
    %c1 = arith.constant 1 : index
    %c0_6 = arith.constant 0 : index
    %c0_7 = arith.constant 0 : index
    %11 = vector.load %arg2[%c1, %c0_6, %c0_7] : memref<7x32x128xbf16, #tpu.memory_space<vmem>>, vector<1x32x128xbf16>
    %12 = vector.shape_cast %11 : vector<1x32x128xbf16> to vector<32x128xbf16>
    %cst_8 = arith.constant dense<0.000000e+00> : vector<16x128xf32>
    %13 = tpu.matmul %10, %12, %cst_8 {dimension_numbers = #tpu.dot_dimension_numbers<[1], [0], [0], [1], [0, 0, 1, 1], [], []>} : vector<16x32xbf16>, vector<32x128xbf16>, vector<16x128xf32> -> vector<16x128xf32>
    %14 = arith.addf %8, %13 : vector<16x128xf32>
    %15 = vector.extract_strided_slice %1 {offsets = [2, 0], sizes = [16, 32], strides = [1, 1]} : vector<22x32xf32> to vector<16x32xf32>
    %16 = arith.truncf %15 : vector<16x32xf32> to vector<16x32xbf16>
    %c2 = arith.constant 2 : index
    %c0_9 = arith.constant 0 : index
    %c0_10 = arith.constant 0 : index
    %17 = vector.load %arg2[%c2, %c0_9, %c0_10] : memref<7x32x128xbf16, #tpu.memory_space<vmem>>, vector<1x32x128xbf16>
    %18 = vector.shape_cast %17 : vector<1x32x128xbf16> to vector<32x128xbf16>
    %cst_11 = arith.constant dense<0.000000e+00> : vector<16x128xf32>
    %19 = tpu.matmul %16, %18, %cst_11 {dimension_numbers = #tpu.dot_dimension_numbers<[1], [0], [0], [1], [0, 0, 1, 1], [], []>} : vector<16x32xbf16>, vector<32x128xbf16>, vector<16x128xf32> -> vector<16x128xf32>
    %20 = arith.addf %14, %19 : vector<16x128xf32>
    %21 = vector.extract_strided_slice %1 {offsets = [3, 0], sizes = [16, 32], strides = [1, 1]} : vector<22x32xf32> to vector<16x32xf32>
    %22 = arith.truncf %21 : vector<16x32xf32> to vector<16x32xbf16>
    %c3 = arith.constant 3 : index
    %c0_12 = arith.constant 0 : index
    %c0_13 = arith.constant 0 : index
    %23 = vector.load %arg2[%c3, %c0_12, %c0_13] : memref<7x32x128xbf16, #tpu.memory_space<vmem>>, vector<1x32x128xbf16>
    %24 = vector.shape_cast %23 : vector<1x32x128xbf16> to vector<32x128xbf16>
    %cst_14 = arith.constant dense<0.000000e+00> : vector<16x128xf32>
    %25 = tpu.matmul %22, %24, %cst_14 {dimension_numbers = #tpu.dot_dimension_numbers<[1], [0], [0], [1], [0, 0, 1, 1], [], []>} : vector<16x32xbf16>, vector<32x128xbf16>, vector<16x128xf32> -> vector<16x128xf32>
    %26 = arith.addf %20, %25 : vector<16x128xf32>
    %27 = vector.extract_strided_slice %1 {offsets = [4, 0], sizes = [16, 32], strides = [1, 1]} : vector<22x32xf32> to vector<16x32xf32>
    %28 = arith.truncf %27 : vector<16x32xf32> to vector<16x32xbf16>
    %c4 = arith.constant 4 : index
    %c0_15 = arith.constant 0 : index
    %c0_16 = arith.constant 0 : index
    %29 = vector.load %arg2[%c4, %c0_15, %c0_16] : memref<7x32x128xbf16, #tpu.memory_space<vmem>>, vector<1x32x128xbf16>
    %30 = vector.shape_cast %29 : vector<1x32x128xbf16> to vector<32x128xbf16>
    %cst_17 = arith.constant dense<0.000000e+00> : vector<16x128xf32>
    %31 = tpu.matmul %28, %30, %cst_17 {dimension_numbers = #tpu.dot_dimension_numbers<[1], [0], [0], [1], [0, 0, 1, 1], [], []>} : vector<16x32xbf16>, vector<32x128xbf16>, vector<16x128xf32> -> vector<16x128xf32>
    %32 = arith.addf %26, %31 : vector<16x128xf32>
    %33 = vector.extract_strided_slice %1 {offsets = [5, 0], sizes = [16, 32], strides = [1, 1]} : vector<22x32xf32> to vector<16x32xf32>
    %34 = arith.truncf %33 : vector<16x32xf32> to vector<16x32xbf16>
    %c5 = arith.constant 5 : index
    %c0_18 = arith.constant 0 : index
    %c0_19 = arith.constant 0 : index
    %35 = vector.load %arg2[%c5, %c0_18, %c0_19] : memref<7x32x128xbf16, #tpu.memory_space<vmem>>, vector<1x32x128xbf16>
    %36 = vector.shape_cast %35 : vector<1x32x128xbf16> to vector<32x128xbf16>
    %cst_20 = arith.constant dense<0.000000e+00> : vector<16x128xf32>
    %37 = tpu.matmul %34, %36, %cst_20 {dimension_numbers = #tpu.dot_dimension_numbers<[1], [0], [0], [1], [0, 0, 1, 1], [], []>} : vector<16x32xbf16>, vector<32x128xbf16>, vector<16x128xf32> -> vector<16x128xf32>
    %38 = arith.addf %32, %37 : vector<16x128xf32>
    %39 = vector.extract_strided_slice %1 {offsets = [6, 0], sizes = [16, 32], strides = [1, 1]} : vector<22x32xf32> to vector<16x32xf32>
    %40 = arith.truncf %39 : vector<16x32xf32> to vector<16x32xbf16>
    %c6 = arith.constant 6 : index
    %c0_21 = arith.constant 0 : index
    %c0_22 = arith.constant 0 : index
    %41 = vector.load %arg2[%c6, %c0_21, %c0_22] : memref<7x32x128xbf16, #tpu.memory_space<vmem>>, vector<1x32x128xbf16>
    %42 = vector.shape_cast %41 : vector<1x32x128xbf16> to vector<32x128xbf16>
    %cst_23 = arith.constant dense<0.000000e+00> : vector<16x128xf32>
    %43 = tpu.matmul %40, %42, %cst_23 {dimension_numbers = #tpu.dot_dimension_numbers<[1], [0], [0], [1], [0, 0, 1, 1], [], []>} : vector<16x32xbf16>, vector<32x128xbf16>, vector<16x128xf32> -> vector<16x128xf32>
    %44 = arith.addf %38, %43 : vector<16x128xf32>
    %c0_24 = arith.constant 0 : index
    %c0_25 = arith.constant 0 : index
    %45 = vector.load %arg3[%c0_24, %c0_25] : memref<1x128xf32, #tpu.memory_space<vmem>>, vector<1x128xf32>
    %46 = vector.broadcast %45 : vector<1x128xf32> to vector<16x128xf32>
    %47 = arith.addf %44, %46 : vector<16x128xf32>
    %48 = vector.shape_cast %47 : vector<16x128xf32> to vector<1x16x128xf32>
    %cst_26 = arith.constant dense<0.000000e+00> : vector<1xf32>
    %49 = vector.multi_reduction <add>, %48, %cst_26 [1, 2] : vector<1x16x128xf32> to vector<1xf32>
    %50 = vector.shape_cast %49 : vector<1xf32> to vector<1x1x1xf32>
    %51 = vector.extract %50[0, 0, 0] : f32 from vector<1x1x1xf32>
    %cst_27 = arith.constant 2.048000e+03 : f32
    %52 = arith.divf %51, %cst_27 : f32
    %53 = vector.broadcast %52 : f32 to vector<16x128xf32>
    %54 = arith.subf %47, %53 : vector<16x128xf32>
    %55 = arith.mulf %54, %54 : vector<16x128xf32>
    %56 = vector.shape_cast %55 : vector<16x128xf32> to vector<1x16x128xf32>
    %cst_28 = arith.constant dense<0.000000e+00> : vector<1xf32>
    %57 = vector.multi_reduction <add>, %56, %cst_28 [1, 2] : vector<1x16x128xf32> to vector<1xf32>
    %58 = vector.shape_cast %57 : vector<1xf32> to vector<1x1x1xf32>
    %59 = vector.extract %58[0, 0, 0] : f32 from vector<1x1x1xf32>
    %cst_29 = arith.constant 2.048000e+03 : f32
    %60 = arith.divf %59, %cst_29 : f32
    %61 = vector.broadcast %52 : f32 to vector<16x128xf32>
    %62 = arith.subf %47, %61 : vector<16x128xf32>
    %cst_30 = arith.constant 9.99999974E-6 : f32
    %63 = arith.addf %60, %cst_30 : f32
    %64 = math.rsqrt %63 : f32
    %65 = vector.broadcast %64 : f32 to vector<16x128xf32>
    %66 = arith.mulf %62, %65 : vector<16x128xf32>
    %c0_31 = arith.constant 0 : index
    %c0_32 = arith.constant 0 : index
    %67 = vector.load %arg4[%c0_31, %c0_32] : memref<1x128xf32, #tpu.memory_space<vmem>>, vector<1x128xf32>
    %68 = vector.broadcast %67 : vector<1x128xf32> to vector<16x128xf32>
    %69 = arith.mulf %66, %68 : vector<16x128xf32>
    %c0_33 = arith.constant 0 : index
    %c0_34 = arith.constant 0 : index
    %70 = vector.load %arg5[%c0_33, %c0_34] : memref<1x128xf32, #tpu.memory_space<vmem>>, vector<1x128xf32>
    %71 = vector.broadcast %70 : vector<1x128xf32> to vector<16x128xf32>
    %72 = arith.addf %69, %71 : vector<16x128xf32>
    %cst_35 = arith.constant 0.000000e+00 : f32
    %73 = vector.broadcast %cst_35 : f32 to vector<16x128xf32>
    %74 = arith.cmpf ogt, %72, %73 : vector<16x128xf32>
    %75 = math.exp %72 : vector<16x128xf32>
    %cst_36 = arith.constant 1.000000e+00 : f32
    %76 = vector.broadcast %cst_36 : f32 to vector<16x128xf32>
    %77 = arith.subf %75, %76 : vector<16x128xf32>
    %78 = arith.select %74, %72, %77 : vector<16x128xi1>, vector<16x128xf32>
    %c0_37 = arith.constant 0 : index
    %c0_38 = arith.constant 0 : index
    %c0_39 = arith.constant 0 : index
    %79 = vector.load %arg6[%c0_37, %c0_38, %c0_39] : memref<1x16x128xf32, #tpu.memory_space<vmem>>, vector<1x16x128xf32>
    %80 = vector.shape_cast %79 : vector<1x16x128xf32> to vector<16x128xf32>
    %81 = vector.shape_cast %78 : vector<16x128xf32> to vector<1x16x128xf32>
    tpu.vector_store %arg6[%c0_37, %c0_38, %c0_39], %81 {strides = array<i32>} : memref<1x16x128xf32, #tpu.memory_space<vmem>>, vector<1x16x128xf32>,
    return
  }
  func.func @transform_0(%arg0: i32) -> (i32, i32, i32) {
    %c0_i32 = arith.constant 0 : i32
    %c0_i32_0 = arith.constant 0 : i32
    %c0_i32_1 = arith.constant 0 : i32
    return %arg0, %c0_i32, %c0_i32_0 : i32, i32, i32
  }
  func.func @transform_1(%arg0: i32) -> (i32, i32, i32) {
    %c0_i32 = arith.constant 0 : i32
    %c0_i32_0 = arith.constant 0 : i32
    %c0_i32_1 = arith.constant 0 : i32
    %c0_i32_2 = arith.constant 0 : i32
    return %c0_i32, %c0_i32_0, %c0_i32_1 : i32, i32, i32
  }
  func.func @transform_2(%arg0: i32) -> (i32, i32) {
    %c0_i32 = arith.constant 0 : i32
    %c0_i32_0 = arith.constant 0 : i32
    %c0_i32_1 = arith.constant 0 : i32
    return %c0_i32, %c0_i32_0 : i32, i32
  }
  func.func @transform_3(%arg0: i32) -> (i32, i32) {
    %c0_i32 = arith.constant 0 : i32
    %c0_i32_0 = arith.constant 0 : i32
    %c0_i32_1 = arith.constant 0 : i32
    return %c0_i32, %c0_i32_0 : i32, i32
  }
  func.func @transform_4(%arg0: i32) -> (i32, i32) {
    %c0_i32 = arith.constant 0 : i32
    %c0_i32_0 = arith.constant 0 : i32
    %c0_i32_1 = arith.constant 0 : i32
    return %c0_i32, %c0_i32_0 : i32, i32
  }
  func.func @transform_5(%arg0: i32) -> (i32, i32, i32) {
    %c0_i32 = arith.constant 0 : i32
    %c0_i32_0 = arith.constant 0 : i32
    %c0_i32_1 = arith.constant 0 : i32
    return %arg0, %c0_i32, %c0_i32_0 : i32, i32, i32
  }
}

</mosaic_0001>

<bundles_post_ra>
// kernel: tpu_custom_call.1
= control target key start
LH: loop header
LB: loop body
LE: loop exit
PB: predicated region body
PF: predicated region fallthrough
CT: control target
= control target key end

     0   :  { %10 = vsyncpa [#allocation3], 0  ;;  %s1401_s0 = inlined_call_operand.vmem [shape: f32[2,22,32], index: 0, kind: input, shape index: {}]   ;;  %s1402_s1 = inlined_call_operand.hbm [shape: bf16[7,32,128], index: 1, kind: input, shape index: {}]   ;;  %s1403_s2 = inlined_call_operand.vmem [shape: f32[1,128], index: 2, kind: input, shape index: {}]   ;;  %s1404_s3 = inlined_call_operand.vmem [shape: f32[1,128], index: 3, kind: input, shape index: {}]   ;;  %s1405_s4 = inlined_call_operand.vmem [shape: f32[1,128], index: 4, kind: input, shape index: {}]   ;;  %s1406_s5 = inlined_call_operand.hbm [shape: f32[2,16,128], index: 5, kind: output, shape index: {}]  }
   0x1   :  { %11 = vsyncpa [#allocation4], 0 }
   0x2   :  { %13 = vsyncpa [#allocation4 + $0x1], 0  ;;  %s1220_s18 = smov 0   ;;  %s1222_s19 = smov 0  }
   0x3   :  { %s1224_s20 = smov 0   ;;  %s1226_s21 = smov 0  }
   0x4 LB: > { %s1241_s22 = sadd.s32 4294967295, %s1180_s21   ;;  %s890_s23 = sadd.s32 4294967294, %s1180_s21   ;;  %s1180_s21 = sphi %s1226_s21, %s1414_s21   ;;  %s1176_s20 = sphi %s1224_s20, %s1413_s20   ;;  %s1172_s19 = sphi %s1222_s19, %s1412_s19   ;;  %s1168_s18 = sphi %s1220_s18, %s1411_s18  }
   0x5   : > { %s1245_s24 = sadd.s32 1, %s1180_s21   ;;  %s136_s25 = sadd.s32 1, %s1176_s20 }
   0x6   : > { %s133_s26 = ssub.s32 %s1180_s21, %s1245_s24  ;;  %p146_p0 = scmp.ne.s32.totalorder %s1176_s20, %s1172_s19 }
   0x7   : > { %p134_p1 = scmp.eq.s32.totalorder %s133_s26, 0  ;;  %p147_p2 = scmp.eq.s32.totalorder %s1241_s22, 1 }
   0x8   : > { %p152_p3 = scmp.ne.s32.totalorder %s1172_s19, %s1168_s18  ;;  %p153_p4 = scmp.eq.s32.totalorder %s890_s23, 1 }
   0x9   : > { %s1256_s27 = scalar_select %p134_p1, %s1176_s20, %s136_s25  }
   0xa   : > { %p1258_p5 = por %p147_p2, %p146_p0  ;;  %p1262_p6 = por %p153_p4, %p152_p3 }
   0xb   : > { %p891_p7 = scmp.ge.s32.totalorder %s1180_s21, 1  ;;  %p160_p8 = scmp.lt.s32.totalorder %s1180_s21, 3 }
   0xc   : > { %s1408_s29 = scalar_select %p1262_p6, 1, 0 }
   0xd   : > { %p1028_p9 = scmp.eq.s32.totalorder %s1241_s22, 0  ;;  %p1269_p10 = pnand %p891_p7, %p160_p8 }
   0xe   : > { %s1182_s6 = smov [#allocation2]  }
   0xf   : > { %s172_s7 = sshll.u32 %s1182_s6, 4  ;;  %p1020_p11 = pneg %p1269_p10  ;;  %s173_s7 = int_to_ptr.vmem [resolvable:$true] %s172_s7 }
  0x10   : > { %s1101_s8 = scalar_lea.vmem %s173_s7, 1792  ;;  %p1109_p3 = scmp.lt.s32.totalorder %s173_s7, %s173_s7 }
  0x11   : > { %p1021_p12 = pnand %p1028_p9, %p1020_p11  ;;  %p1102_p0 = scmp.ne.s32.totalorder %s173_s7, %s1101_s8 }
  0x12   : > { %p1110_p4 = scmp.lt.s32.totalorder %s1101_s8, %s1101_s8 }
  0x13   : > { %p1092_p13 = pneg %p1021_p12 }
  0x14   : > { %p1111_p6 = por %p1110_p4, %p1109_p3 }
  0x15   : > { %p1104_p1 = pnand %p1102_p0, %p1092_p13 }
  0x17   : > { %p1105_p2 = pneg %p1104_p1 }
  0x19   : > { %p1112_p7 = pnand %p1111_p6, %p1105_p2 }
  0x1b   : > { %1115 = shalt.err (!%p1112_p7)
}
  0x1c   : > { %s1183_s9 = smov 64   ;;  %s1184_s10 = smov 4  }
  0x1d   : > { %1023 = dma.hbm_to_vmem [thread:$0]  (!%p1021_p12), %s1402_s1, 1792, %s173_s7, [#allocation3], %s1183_s9, %s1183_s9, %s1184_s10  }
  0x1e   : > { %205 = sbr.rel (%p1269_p10) target bundleno = 799 (0x31f), region = 40 }
  0x23   : > { %1159 = dma.done.wait (%p1028_p9), [#allocation3], 1792  }
  0x24   : > { %1161 = vsyncadd (%p1028_p9), [#allocation3], 4294965504  ;;  %p233_p8 = scmp.lt.s32.totalorder %s1241_s22, 1  ;;  %v1185_v0 = vmov 0.0   ;;  %vm1186_vm0 = vmmov 0   ;;  %v1070_v1 = vld [vmem:[#allocation2 + $0x18] sm:$0xff]  }
  0x25   : > { %951 = vmatprep.subr.bf16.mxu0 %v1185_v0  ;;  %959 = vmatprep.subr.bf16.mxu1 %v1185_v0  ;;  %v1071_v2 = vld [vmem:[#allocation2 + $0x8] sm:$0xff]   ;;  %v1072_v3 = vld [vmem:[#allocation2 + $0x10] sm:$0xff]   ;;  %v1073_v4 = vld [vmem:[#allocation2] sm:$0xff]   ;;  %vm278_vm1 = vcmask 261120   ;;  %vm253_vm2 = vsmask.f32 7424 }
  0x26   : > { %955 = vmatprep.mubr.msk.bf16.mxu0 %vm1186_vm0, %v1185_v0  ;;  %963 = vmatprep.mubr.msk.bf16.mxu1 %vm1186_vm0, %v1185_v0  ;;  %s234_s13 = scalar_select %p233_p8, %s1241_s22, 1  ;;  %v1075_v13 = vld [vmem:[#allocation2 + $0x38] sm:$0xff]   ;;  %v1074_v16 = vld [vmem:[#allocation2 + $0x28] sm:$0xff]   ;;  %v1077_v17 = vld [vmem:[#allocation2 + $0x30] sm:$0xff]   ;;  %vm452_vm3 = vsmask.f32 6400 }
  0x27   : > { %952 = vmatpush3.bf16.msra.mxu0 %v1070_v1  ;;  %960 = vmatpush3.bf16.msra.mxu1 %v1071_v2  ;;  %v1076_v26 = vld [vmem:[#allocation2 + $0x20] sm:$0xff]   ;;  %v1079_v30 = vld [vmem:[#allocation2 + $0x58] sm:$0xff]   ;;  %vm385_vm4 = vcmask 1046528   ;;  %v1078_v37 = vld [vmem:[#allocation2 + $0x48] sm:$0xff]   ;;  %vm592_vm5 = vsmask.f32 5376 }
  0x28   : > { %s1007_s14 = smul.u32 24, %s234_s13  ;;  %953 = vmatprep.subr.bf16.mxu0 %v1185_v0  ;;  %961 = vmatprep.subr.bf16.mxu1 %v1185_v0  ;;  %v1081_v38 = vld [vmem:[#allocation2 + $0x50] sm:$0xff]   ;;  %v1080_v41 = vld [vmem:[#allocation2 + $0x40] sm:$0xff]   ;;  %vm525_vm6 = vcmask 1045504   ;;  %v1082_v46 = vld [vmem:[#allocation2 + $0x68] sm:$0xff]   ;;  %vm663_vm7 = vcmask 1044480  }
  0x29   : > { %v1083_v47 = vld [vmem:[#allocation2 + $0x60] sm:$0xff]   ;;  %s929_s16 = sshll.u32 %s1241_s22, 8 }
  0x2a   : > { %s237_s17 = scalar_lea.vmem %s1401_s0, %s1007_s14  ;;  %s230_s14 = sand.u32 1, %s1172_s19  }
  0x2b   : > { %v239_v5 = vld [vmem:[%s237_s17] sm:$0xff]  ;;  %v240_v6 = vld [vmem:[%s237_s17 + $0x8] sm:$0xff]  ;;  %v241_v7 = vld [vmem:[%s237_s17 + $0x10] sm:$0x3f]  ;;  %954 = vmatpush3.bf16.msra.mxu0 %v1072_v3  ;;  %962 = vmatpush3.bf16.msra.mxu1 %v1073_v4  ;;  %s896_s15 = sshll.u32 %s230_s14, 4  ;;  %s1361_s22 = scalar_lea.sflag [#allocation4], %s230_s14 }
  0x2c   : > { %v1299_v8 = vpack.c.bf16 %v240_v6, %v239_v5  ;;  %v1301_v9 = vpack.c.bf16 %v241_v7, %v241_v7  ;;  %967 = vmatprep.subr.bf16.mxu0 %v1185_v0  ;;  %975 = vmatprep.subr.bf16.mxu1 %v1185_v0  ;;  %s232_s17 = scalar_lea.vmem [#allocation5], %s896_s15 }
  0x2d   : > { %s816_s23 = sshll.u32 %s232_s17, 4  ;;  %s1359_s23 = int_to_ptr.vmem [resolvable:$true] %s816_s23 }
  0x2e   : > { %v255_v10 = vshrl.u32 %v1299_v8, 16  ;;  %v257_v11 = vshll.u32 %v1299_v8, 16  ;;  %v262_v12 = vshll.u32 %v1301_v9, 16  ;;  %964 = vmatmul.mubr.msk.bf16.vlgmr.msra.gmra.mxu1 %vm278_vm1, %v1299_v8  ;;  %v456_v20 = vshrl.u32 %v1301_v9, 16 }
  0x2f   : > { %976 = vmatpush3.bf16.msra.mxu1 %v1075_v13  ;;  %979 = vmatprep.mubr.msk.bf16.mxu1 %vm1186_vm0, %v1185_v0  ;;  %v386_v27 = vrot.slane %v1299_v8, 1  ;;  %v387_v28 = vrot.slane %v1301_v9, 1  ;;  %v526_v42 = vrot.slane %v1299_v8, 2  ;;  %v527_v43 = vrot.slane %v1301_v9, 2 }
  0x30   : > { %v259_v14 = vrot.slane %v257_v11, 1  ;;  %v264_v15 = vrot.slane %v262_v12, 1  ;;  %v453_v18 = vrot.slane %v255_v10, 1  ;;  %v454_v19 = vrot.slane %v257_v11, 2  ;;  %977 = vmatprep.subr.bf16.mxu1 %v1185_v0 }
  0x31   : > { %v459_v21 = vrot.slane %v262_v12, 2  ;;  %v458_v24 = vrot.slane %v456_v20, 1  ;;  %v593_v31 = vrot.slane %v255_v10, 2  ;;  %v594_v32 = vrot.slane %v257_v11, 3 }
  0x32   : > { %v260_v22 = vor.u32 %v259_v14, %v255_v10  ;;  %v455_v23 = vor.u32 %v454_v19, %v453_v18  ;;  %v596_v33 = vrot.slane %v456_v20, 2  ;;  %v597_v34 = vrot.slane %v262_v12, 3 }
  0x33   : > { %v460_v29 = vor.u32 %v459_v21, %v458_v24  ;;  %978 = vmatpush3.bf16.msra.mxu1 %v1077_v17  ;;  %v388_v36 = vsel %vm385_vm4, %v386_v27, %v387_v28  ;;  %v595_v39 = vor.u32 %v594_v32, %v593_v31  ;;  %v528_v45 = vsel %vm525_vm6, %v526_v42, %v527_v43 }
  0x34   : > { %v265_v25 = vsel %vm253_vm2, %v260_v22, %v264_v15  ;;  %991 = vmatprep.subr.bf16.mxu1 %v1185_v0  ;;  %v598_v40 = vor.u32 %v597_v34, %v596_v33  ;;  %v664_v48 = vrot.slane %v1299_v8, 3  ;;  %v665_v49 = vrot.slane %v1301_v9, 3 }
  0x35   : > { %956 = vmatmul.mubr.msk.bf16.vlgmr.msra.gmra.mxu0 %vm278_vm1, %v265_v25  ;;  %v461_v35 = vsel %vm452_vm3, %v455_v23, %v460_v29  ;;  %v919_v25 = vld [vmem:[%s1403_s2] ss:$0 sm:$0xff] }
  0x36   : > { %968 = vmatpush3.bf16.msra.mxu0 %v1074_v16  ;;  %971 = vmatprep.mubr.msk.bf16.mxu0 %vm1186_vm0, %v1185_v0  ;;  %v599_v44 = vsel %vm592_vm5, %v595_v39, %v598_v40  ;;  %v666_v50 = vsel %vm663_vm7, %v664_v48, %v665_v49 }
  0x37   : > { %969 = vmatprep.subr.bf16.mxu0 %v1185_v0  ;;  %980 = vmatmul.mubr.msk.bf16.vlgmr.msra.gmra.mxu1 %vm278_vm1, %v461_v35 }
  0x38   : > { %992 = vmatpush3.bf16.msra.mxu1 %v1079_v30  ;;  %995 = vmatprep.mubr.msk.bf16.mxu1 %vm1186_vm0, %v1185_v0 }
  0x39   : > { %993 = vmatprep.subr.bf16.mxu1 %v1185_v0 }
  0x3a   : > { %970 = vmatpush3.bf16.msra.mxu0 %v1076_v26 }
  0x3b   : > { %983 = vmatprep.subr.bf16.mxu0 %v1185_v0 }
  0x3c   : > { %994 = vmatpush3.bf16.msra.mxu1 %v1081_v38 }
  0x3d   : > { %972 = vmatmul.mubr.msk.bf16.vlgmr.msra.gmra.mxu0 %vm278_vm1, %v388_v36 }
  0x3e   : > { %984 = vmatpush3.bf16.msra.mxu0 %v1078_v37  ;;  %987 = vmatprep.mubr.msk.bf16.mxu0 %vm1186_vm0, %v1185_v0 }
  0x3f   : > { %985 = vmatprep.subr.bf16.mxu0 %v1185_v0  ;;  %996 = vmatmul.mubr.msk.bf16.vlgmr.msra.gmra.mxu1 %vm278_vm1, %v599_v44 }
  0x42   : > { %986 = vmatpush3.bf16.msra.mxu0 %v1080_v41 }
  0x43   : > { %999 = vmatprep.subr.bf16.mxu0 %v1185_v0 }
  0x45   : > { %988 = vmatmul.mubr.msk.bf16.vlgmr.msra.gmra.mxu0 %vm278_vm1, %v528_v45 }
  0x46   : > { %1000 = vmatpush3.bf16.msra.mxu0 %v1082_v46  ;;  %1003 = vmatprep.mubr.msk.bf16.mxu0 %vm1186_vm0, %v1185_v0 }
  0x47   : > { %1001 = vmatprep.subr.bf16.mxu0 %v1185_v0 }
  0x4a   : > { %1002 = vmatpush3.bf16.msra.mxu0 %v1083_v47 }
  0x4d   : > { %1004 = vmatmul.mubr.msk.bf16.vlgmr.msra.gmra.mxu0 %vm278_vm1, %v666_v50 }
  0xee   : > { %v371_v51 = vpop.f32.mrf.mxu1 }
  0xf0   : > { %v965_v52 = vpop.f32.mrf.mxu1 }
  0xf2   : > { %v374_v54 = vpop.f32.mrf.mxu1 }
  0xf4   : > { %v966_v56 = vpop.f32.mrf.mxu1 }
  0xf5   : > { %v316_v53 = vpop.f32.mrf.mxu0 }
  0xf6   : > { %v372_v3 = vadd.f32 %v371_v51, %v316_v53 }
  0xf7   : > { %v957_v55 = vpop.f32.mrf.mxu0  ;;  %v511_v58 = vpop.f32.mrf.mxu1 }
  0xf9   : > { %v319_v57 = vpop.f32.mrf.mxu0  ;;  %v981_v60 = vpop.f32.mrf.mxu1 }
  0xfa   : > { %v375_v6 = vadd.f32 %v374_v54, %v319_v57  ;;  %v920_v54 = vld [vmem:[%s1404_s3] ss:$0 sm:$0xff] }
  0xfb   : > { %v958_v59 = vpop.f32.mrf.mxu0  ;;  %v514_v62 = vpop.f32.mrf.mxu1  ;;  %v921_v57 = vld [vmem:[%s1405_s4] ss:$0 sm:$0xff] }
  0xfd   : > { %v438_v61 = vpop.f32.mrf.mxu0  ;;  %v982_v1 = vpop.f32.mrf.mxu1 }
  0xfe   : > { %v445_v7 = vadd.f32 %v438_v61, %v372_v3 }
  0xff   : > { %v973_v63 = vpop.f32.mrf.mxu0  ;;  %v649_v2 = vpop.f32.mrf.mxu1 }
 0x100   : > { %v518_v13 = vadd.f32 %v511_v58, %v445_v7 }
 0x101   : > { %v441_v0 = vpop.f32.mrf.mxu0  ;;  %v997_v5 = vpop.f32.mrf.mxu1 }
 0x102   : > { %v446_v10 = vadd.f32 %v441_v0, %v375_v6 }
 0x103   : > { %v974_v4 = vpop.f32.mrf.mxu0  ;;  %v652_v9 = vpop.f32.mrf.mxu1 }
 0x104   : > { %v519_v15 = vadd.f32 %v514_v62, %v446_v10 }
 0x105   : > { %v578_v8 = vpop.f32.mrf.mxu0  ;;  %v998_v12 = vpop.f32.mrf.mxu1 }
 0x106   : > { %v585_v16 = vadd.f32 %v578_v8, %v518_v13 }
 0x107   : > { %v989_v11 = vpop.f32.mrf.mxu0 }
 0x108   : > { %v656_v20 = vadd.f32 %v649_v2, %v585_v16 }
 0x109   : > { %v581_v14 = vpop.f32.mrf.mxu0 }
 0x10a   : > { %v586_v18 = vadd.f32 %v581_v14, %v519_v15 }
 0x10b   : > { %v990_v17 = vpop.f32.mrf.mxu0 }
 0x10c   : > { %v657_v22 = vadd.f32 %v652_v9, %v586_v18 }
 0x10d   : > { %v716_v19 = vpop.f32.mrf.mxu0 }
 0x10e   : > { %v723_v23 = vadd.f32 %v716_v19, %v656_v20 }
 0x10f   : > { %v1005_v21 = vpop.f32.mrf.mxu0 }
 0x110   : > { %v732_v28 = vadd.f32 %v919_v25, %v723_v23 }
 0x111   : > { %v719_v24 = vpop.f32.mrf.mxu0 }
 0x112   : > { %v724_v26 = vadd.f32 %v719_v24, %v657_v22 }
 0x113   : > { %v1006_v27 = vpop.f32.mrf.mxu0 }
 0x114   : > { %v733_v29 = vadd.f32 %v919_v25, %v724_v26 }
 0x116   : > { %v734_v30 = vadd.f32 %v733_v29, %v732_v28 }
 0x118   : > { %735 = vadd.xlane.f32.xlu0 %v734_v30 }
 0x1a1   : > { %v736_v31 = vpop.xlane.xlu0 %735 }
 0x1a2   : > { %v737_v32 = vrot.slane %v736_v31, 4 }
 0x1a4   : > { %v738_v33 = vadd.f32 %v737_v32, %v736_v31 }
 0x1a6   : > { %v739_v34 = vrot.slane %v738_v33, 2 }
 0x1a8   : > { %v740_v35 = vadd.f32 %v739_v34, %v738_v33 }
 0x1aa   : > { %v741_v36 = vrot.slane %v740_v35, 1 }
 0x1ac   : > { %v742_v37 = vadd.f32 %v741_v36, %v740_v35 }
 0x1ae   : > { %1008 = vpush %v742_v37 }
 0x1df   : > { %s1009_s26 = spop %1008 }
 0x1e0   : > { %s746_s30 = smul.f32 0.00048828125, %s1009_s26 }
 0x1e2   : > { %v747_v38 = vstv %s746_s30  ;;  %s1357_s30 = scalar_lea.hbm %s1406_s5, %s929_s16 }
 0x1e3   : > { %v748_v39 = vsub.f32 %v732_v28, %v747_v38  ;;  %v749_v40 = vsub.f32 %v733_v29, %v747_v38 }
 0x1e5   : > { %v750_v41 = vmul.f32 %v748_v39, %v748_v39  ;;  %v751_v42 = vmul.f32 %v749_v40, %v749_v40 }
 0x1e7   : > { %v752_v43 = vadd.f32 %v751_v42, %v750_v41 }
 0x1e9   : > { %753 = vadd.xlane.f32.xlu0 %v752_v43 }
 0x272   : > { %v754_v44 = vpop.xlane.xlu0 %753 }
 0x273   : > { %v755_v45 = vrot.slane %v754_v44, 4 }
 0x275   : > { %v756_v46 = vadd.f32 %v755_v45, %v754_v44 }
 0x277   : > { %v757_v47 = vrot.slane %v756_v46, 2 }
 0x279   : > { %v758_v48 = vadd.f32 %v757_v47, %v756_v46 }
 0x27b   : > { %v759_v49 = vrot.slane %v758_v48, 1 }
 0x27d   : > { %v760_v50 = vadd.f32 %v759_v49, %v758_v48 }
 0x27f   : > { %1010 = vpush %v760_v50 }
 0x2b0   : > { %s1011_s6 = spop %1010 }
 0x2b1   : > { %s764_s7 = smul.f32 0.00048828125, %s1011_s6  ;;  %s1116_s6 = scalar_lea.vmem %s1359_s23, 256 }
 0x2b2   : > { %p1117_p6 = scmp.ne.s32.totalorder %s1359_s23, %s1116_s6 }
 0x2b3   : > { %s765_s8 = sadd.f32 1e-05, %s764_s7  ;;  %s1187_s7 = smov [#allocation5]  }
 0x2b4   : > { %p1118_p9 = pnand %p1117_p6, %p1258_p5 }
 0x2b5   : > { %v766_v51 = vstv %s765_s8  ;;  %s1120_s8 = sshll.u32 %s1187_s7, 4  ;;  %s1121_s8 = int_to_ptr.vmem [resolvable:$false] %s1120_s8 }
 0x2b6   : > { %1084 = vrsqrt.f32 %v766_v51  ;;  %p1119_p10 = pneg %p1118_p9  ;;  %p1123_p11 = scmp.lt.s32.totalorder %s1359_s23, %s1121_s8 }
 0x2c3   : > { %v1085_v52 = vpop.eup %1084 }
 0x2c4   : > { %1012 = vpush %v1085_v52 }
 0x2f5   : > { %s1013_s9 = spop %1012 }
 0x2f6   : > { %v769_v53 = vstv %s1013_s9  ;;  %s1122_s9 = scalar_lea.vmem %s1121_s8, 512 }
 0x2f7   : > { %v770_v55 = vmul.f32 %v769_v53, %v748_v39  ;;  %v771_v56 = vmul.f32 %v769_v53, %v749_v40  ;;  %p1124_p12 = scmp.lt.s32.totalorder %s1122_s9, %s1116_s6 }
 0x2f9   : > { %v779_v58 = vmul.f32 %v920_v54, %v770_v55  ;;  %v780_v59 = vmul.f32 %v920_v54, %v771_v56  ;;  %p1125_p13 = por %p1124_p12, %p1123_p11 }
 0x2fb   : > { %v788_v60 = vadd.f32 %v921_v57, %v779_v58  ;;  %v789_v61 = vadd.f32 %v921_v57, %v780_v59  ;;  %p1126_p0 = pnand %p1125_p13, %p1119_p10 }
 0x2fd   : > { %v792_v62 = vmul.f32 1.442695, %v788_v60  ;;  %v794_v63 = vmul.f32 1.442695, %v789_v61  ;;  %vm790_vm8 = vcmp.gt.f32.partialorder %v788_v60, 0.0  ;;  %vm791_vm9 = vcmp.gt.f32.partialorder %v789_v61, 0.0 }
 0x2ff   : > { %1086 = vpow2.f32 %v792_v62 }
 0x300   : > { %1088 = vpow2.f32 %v794_v63 }
 0x30c   : > { %v1087_v1 = vpop.eup %1086 }
 0x30d   : > { %v1089_v0 = vpop.eup %1088  ;;  %v922_v2 = vadd.f32 -1.0, %v1087_v1 }
 0x30e   : > { %v923_v3 = vadd.f32 -1.0, %v1089_v0 }
 0x30f   : > { %v798_v4 = vsel %vm790_vm8, %v788_v60, %v922_v2 }
 0x310   : > { %v799_v5 = vsel %vm791_vm9, %v789_v61, %v923_v3  ;;  %800 = vst [vmem:[%s232_s17] sm:$0xff] %v798_v4 }
 0x311   : > { %801 = vst [vmem:[%s232_s17 + $0x8] sm:$0xff] %v799_v5 }
 0x312   : > { %1129 = shalt.err (!%p1126_p0)
}
 0x313   : > { %s1130_s10 = scalar_lea.hbm %s1357_s30, 256  ;;  %s1134_s13 = scalar_lea.hbm %s1406_s5, 512 }
 0x314   : > { %p1131_p1 = scmp.ne.s32.totalorder %s1357_s30, %s1130_s10  ;;  %p1135_p4 = scmp.lt.s32.totalorder %s1357_s30, %s1406_s5 }
 0x315   : > { %p1136_p7 = scmp.lt.s32.totalorder %s1134_s13, %s1130_s10 }
 0x316   : > { %p1132_p2 = pnand %p1131_p1, %p1258_p5 }
 0x317   : > { %p1137_p8 = por %p1136_p7, %p1135_p4 }
 0x318   : > { %p1133_p3 = pneg %p1132_p2 }
 0x31a   : > { %p1138_p6 = pnand %p1137_p8, %p1133_p3 }
 0x31c   : > { %1141 = shalt.err (!%p1138_p6)
}
 0x31d   : > { %s1188_s16 = smov 128   ;;  %s1189_s17 = smov 8  }
 0x31e   : > { %1018 = dma.vmem_to_hbm [thread:$0]  (%p1258_p5), %s1359_s23, 256, %s1357_s30, %s1361_s22, %s1188_s16, %s1188_s16, %s1189_s17  }
 0x31f PF: > { %p1030_p9 = scmp.ge.s32.totalorder %s1180_s21, 2  ;;  %s831_s25 = sand.u32 1, %s1168_s18  }
 0x320   : > { %p1410_p10 = scmp.ne.s32.totalorder %s1408_s29, 0  ;;  %s832_s26 = scalar_lea.sflag [#allocation4], %s831_s25 }
 0x322   : > { %p1025_p11 = pnand %p1030_p9, %p1410_p10 }
 0x324   : > { %p1026_p12 = pneg %p1025_p11 }
 0x326   : > { %1163 = dma.done.wait (%p1026_p12), %s832_s26, 256  }
 0x327   : > { %1165 = vsyncadd (%p1026_p12), %s832_s26, 4294967040  ;;  %p16_p13 = scmp.ge.s32.totalorder %s1245_s24, 4   ;;  %s1411_s18 = smov %s1172_s19 }
 0x328   : > { %s1412_s19 = smov %s1176_s20  ;;  %s1413_s20 = smov %s1256_s27 }
 0x329   : > { %s1414_s21 = smov %s1245_s24  ;;  %18 = sbr.rel (!%p16_p13) target bundleno = 4 (0x4), region = 86 }
 0x32e   :  { %837 = vsyncpa [#allocation3], 1 }
 0x32f   :  { %839 = vsyncpa [#allocation3 + $0x1], 1 }
 0x330   :  { %840 = vsyncpa [#allocation4], 1 }
 0x331   :  { %842 = vsyncpa [#allocation4 + $0x1], 1 }

</bundles_post_ra>
